<compile_context>
chip_gen: v5e
topology: v5e:2x2
jax: 0.10.0
libtpu: 0.0.40
codegen_flags: <defaults>
</compile_context>

<pallas_src>
import functools
import math

import jax
import jax.numpy as jnp
from jax.experimental import pallas as pl
from jax.experimental.pallas import tpu as pltpu

_TWO_PI = 2.0 * math.pi

# Even Taylor coefficients of cos(2*pi*r) in u = r**2, highest degree first
# (c8 .. c1); c0 = 1.  Truncation error over |r| <= 0.5 is <= pi**18 / 18!
# ~ 1.4e-7, well inside f32 accuracy for this use.
_COS2PI_POLY = tuple(
    ((-1.0) ** k) * (2.0 * math.pi) ** (2 * k) / math.factorial(2 * k)
    for k in range(8, 0, -1)
)


def _cos2pi(x):
    """cos(2*pi*x) via exact unit-period reduction + even polynomial (f32)."""
    r = x - jnp.floor(x + jnp.float32(0.5))          # r in (-0.5, 0.5]
    u = r * r
    p = jnp.float32(_COS2PI_POLY[0])
    for c in _COS2PI_POLY[1:]:
        p = p * u + jnp.float32(c)
    return p * u + jnp.float32(1.0)


def _fourier_kernel(t_ref, w_ref, b_ref, o_ref, *, approx_cos):
    # t_ref: (TB, 1) f32, w_ref/b_ref: (1, TC) f32, o_ref: (TB, TC)
    t = t_ref[...]
    w = w_ref[...]
    b = b_ref[...]
    if approx_cos:
        # Phase in "turns": no 2*pi scale needed before the periodic reduction.
        phase = t * w + b                            # broadcast -> (TB, TC)
        out = _cos2pi(phase)
    else:
        # Fold 2*pi into the O(TC) parameter rows, then library cos.
        w2 = jnp.float32(_TWO_PI) * w
        b2 = jnp.float32(_TWO_PI) * b
        out = jnp.cos(t * w2 + b2)
    o_ref[...] = out.astype(o_ref.dtype)


def _round_down_multiple(x, m):
    return (x // m) * m


def _round_up_multiple(x, m):
    return -(-x // m) * m


def _choose_tile_c(C, max_tile_c, want_split):
    """Largest 128-multiple tile dividing C (lane-dense, unmasked stores);
    prefer tiles giving >= 2 channel blocks when want_split."""
    if C <= 128 or C % 128 != 0:
        return C                                     # single full-extent block
    divisors = [m for m in range(128, C + 1, 128) if C % m == 0]
    feasible = [m for m in divisors if m <= max_tile_c]
    if want_split:
        split = [m for m in feasible if C // m >= 2]
        if split:
            return split[-1]
    if feasible:
        return feasible[-1]
    # No 128-aligned divisor fits the cap: accept a ragged final block.
    return max(128, _round_down_multiple(max_tile_c, 128))


def fourier_embedding(t_hat, w, b, *, tile_b=None, max_tile_c=4096,
                      out_dtype=jnp.float32, approx_cos=True,
                      target_block_bytes=8 * 1024 * 1024):
    """t_hat: (B, 1), w: (C,), b: (C,) -> (B, C) out_dtype."""
    B = t_hat.shape[0]
    C = w.shape[0]
    t2d = t_hat.reshape(B, 1).astype(jnp.float32)
    w2d = w.reshape(1, C).astype(jnp.float32)
    b2d = b.reshape(1, C).astype(jnp.float32)

    out_itemsize = jnp.dtype(out_dtype).itemsize
    # Sub-32-bit outputs pack rows along sublanes: align batch tiles to the
    # packed row count (8 for f32, 16 for bf16/f16, 32 for 8-bit dtypes).
    row_align = 8 * max(1, 4 // out_itemsize)
    batch_can_split = B >= 2 * row_align

    # Channel tiling; split channels when batch collapses to one block so the
    # grid has >= 2 steps (v7x dual TensorCore).
    tile_c = _choose_tile_c(C, max_tile_c, want_split=not batch_can_split)

    # Batch tiling: target ~target_block_bytes per output block, capped so the
    # lane-padded (tile_b, 1) t-column stays <= ~2 MiB per buffer and the
    # double-buffered working set stays far under every scoped VMEM limit.
    if tile_b is None:
        tb = target_block_bytes // max(tile_c * out_itemsize, 1)
        tb = min(tb, 4096)
        tb = max(tb, row_align)
        tb = min(tb, B)
        if batch_can_split:
            # Keep >= 2 batch grid steps so both v7x TensorCores get work.
            tb = min(tb, _round_up_multiple(-(-B // 2), row_align))
        tile_b = tb
    tile_b = min(tile_b, B)
    if B >= row_align:
        tile_b = max(row_align, _round_down_multiple(tile_b, row_align))
    else:
        tile_b = B                                   # full-extent batch block

    grid = (pl.cdiv(B, tile_b), pl.cdiv(C, tile_c))  # channel axis innermost

    # Explicit VMEM budget: double-buffered output + lane-padded t column +
    # double-buffered (1, tile_c) parameter rows, plus margin.
    out_block = tile_b * tile_c * out_itemsize
    t_block = tile_b * 128 * 4                       # (TB, 1) pads lanes to 128
    par_block = 8 * tile_c * 4                       # (1, TC) pads sublanes to 8
    vmem_needed = 2 * out_block + 2 * t_block + 4 * par_block
    vmem_limit = min(64 * 1024 * 1024,
                     max(4 * 1024 * 1024, int(vmem_needed * 1.25) + (1 << 20)))

    cost = pl.CostEstimate(
        flops=(22 if approx_cos else 2) * B * C,     # FMA + polynomial ops
        transcendentals=0 if approx_cos else B * C,
        bytes_accessed=B * C * out_itemsize + 4 * B + 2 * 4 * C,
    )

    kernel = functools.partial(_fourier_kernel, approx_cos=approx_cos)

    return pl.pallas_call(
        kernel,
        out_shape=jax.ShapeDtypeStruct((B, C), out_dtype),
        grid_spec=pltpu.PrefetchScalarGridSpec(
            num_scalar_prefetch=0,
            grid=grid,
            in_specs=[
                # t block index is constant across the inner (channel) axis,
                # so Pallas reuses it without a fresh DMA per inner step.
                pl.BlockSpec((tile_b, 1), lambda i, j: (i, 0)),
                pl.BlockSpec((1, tile_c), lambda i, j: (0, j)),
                pl.BlockSpec((1, tile_c), lambda i, j: (0, j)),
            ],
            out_specs=pl.BlockSpec((tile_b, tile_c), lambda i, j: (i, j)),
        ),
        compiler_params=pltpu.CompilerParams(
            dimension_semantics=("parallel", "parallel"),
            vmem_limit_bytes=vmem_limit),
        cost_estimate=cost,
    )(t2d, w2d, b2d)


if __name__ == "__main__":
    key = jax.random.PRNGKey(0)
    k_w, k_b, k_t = jax.random.split(key, 3)

    B = 16     # batch of per-sample noise levels
    C = 256    # embedding channels (module's `c`)

    # Deterministic "parameter init": normal(mean=0, std=1), like the module.
    w = jax.random.normal(k_w, (C,), dtype=jnp.float32)
    b = jax.random.normal(k_b, (C,), dtype=jnp.float32)

    # t_hat: per-sample scalar noise level, shaped (B, 1) for broadcasting.
    t_hat = jax.random.normal(k_t, (B, 1), dtype=jnp.float32)

    out = fourier_embedding(t_hat, w, b)
    out = jax.block_until_ready(out)

    # Reference check in plain JAX (same math as the PyTorch module).
    ref = jnp.cos(2.0 * jnp.pi * (t_hat * w[None, :] + b[None, :]))
    assert out.shape == (B, C)
    assert out.dtype == jnp.float32
    assert jnp.allclose(out, ref, atol=5e-5, rtol=1e-5), float(
        jnp.max(jnp.abs(out - ref)))

    print("KERNEL_OK")
</pallas_src>

<mosaic_0001>
module attributes {stable_mosaic.version = 11 : i64} {
  func.func @_fourier_kernel(%arg0: i32, %arg1: i32, %arg2: memref<8x1xf32, #tpu.memory_space<vmem>>, %arg3: memref<1x256xf32, #tpu.memory_space<vmem>>, %arg4: memref<1x256xf32, #tpu.memory_space<vmem>>, %arg5: memref<8x256xf32, #tpu.memory_space<vmem>>) attributes {dimension_semantics = [#tpu.dimension_semantics<parallel>, #tpu.dimension_semantics<parallel>], iteration_bounds = array<i64: 2, 1>, scalar_prefetch = 0 : i64, scratch_operands = 0 : i64, tpu.core_type = #tpu.core_type<tc>, window_params = [{transform_indices = @transform_0, window_bounds = array<i64: 8, 1>}, {transform_indices = @transform_1, window_bounds = array<i64: 1, 256>}, {transform_indices = @transform_2, window_bounds = array<i64: 1, 256>}, {transform_indices = @transform_3, window_bounds = array<i64: 8, 256>}]} {
    %c0 = arith.constant 0 : index
    %c0_0 = arith.constant 0 : index
    %0 = vector.load %arg2[%c0, %c0_0] : memref<8x1xf32, #tpu.memory_space<vmem>>, vector<8x1xf32>
    %c0_1 = arith.constant 0 : index
    %c0_2 = arith.constant 0 : index
    %1 = vector.load %arg3[%c0_1, %c0_2] : memref<1x256xf32, #tpu.memory_space<vmem>>, vector<1x256xf32>
    %c0_3 = arith.constant 0 : index
    %c0_4 = arith.constant 0 : index
    %2 = vector.load %arg4[%c0_3, %c0_4] : memref<1x256xf32, #tpu.memory_space<vmem>>, vector<1x256xf32>
    %3 = vector.broadcast %0 : vector<8x1xf32> to vector<8x256xf32>
    %4 = vector.broadcast %1 : vector<1x256xf32> to vector<8x256xf32>
    %5 = arith.mulf %3, %4 : vector<8x256xf32>
    %6 = vector.broadcast %2 : vector<1x256xf32> to vector<8x256xf32>
    %7 = arith.addf %5, %6 : vector<8x256xf32>
    %cst = arith.constant 5.000000e-01 : f32
    %8 = vector.broadcast %cst : f32 to vector<8x256xf32>
    %9 = arith.addf %7, %8 : vector<8x256xf32>
    %10 = math.floor %9 : vector<8x256xf32>
    %11 = arith.subf %7, %10 : vector<8x256xf32>
    %12 = arith.mulf %11, %11 : vector<8x256xf32>
    %cst_5 = arith.constant 0.282005966 : f32
    %13 = vector.broadcast %cst_5 : f32 to vector<8x256xf32>
    %14 = arith.mulf %13, %12 : vector<8x256xf32>
    %cst_6 = arith.constant -1.71439075 : f32
    %15 = vector.broadcast %cst_6 : f32 to vector<8x256xf32>
    %16 = arith.addf %14, %15 : vector<8x256xf32>
    %17 = arith.mulf %16, %12 : vector<8x256xf32>
    %cst_7 = arith.constant 7.90353632 : f32
    %18 = vector.broadcast %cst_7 : f32 to vector<8x256xf32>
    %19 = arith.addf %17, %18 : vector<8x256xf32>
    %20 = arith.mulf %19, %12 : vector<8x256xf32>
    %cst_8 = arith.constant -26.4262562 : f32
    %21 = vector.broadcast %cst_8 : f32 to vector<8x256xf32>
    %22 = arith.addf %20, %21 : vector<8x256xf32>
    %23 = arith.mulf %22, %12 : vector<8x256xf32>
    %cst_9 = arith.constant 60.2446404 : f32
    %24 = vector.broadcast %cst_9 : f32 to vector<8x256xf32>
    %25 = arith.addf %23, %24 : vector<8x256xf32>
    %26 = arith.mulf %25, %12 : vector<8x256xf32>
    %cst_10 = arith.constant -85.4568176 : f32
    %27 = vector.broadcast %cst_10 : f32 to vector<8x256xf32>
    %28 = arith.addf %26, %27 : vector<8x256xf32>
    %29 = arith.mulf %28, %12 : vector<8x256xf32>
    %cst_11 = arith.constant 64.9393921 : f32
    %30 = vector.broadcast %cst_11 : f32 to vector<8x256xf32>
    %31 = arith.addf %29, %30 : vector<8x256xf32>
    %32 = arith.mulf %31, %12 : vector<8x256xf32>
    %cst_12 = arith.constant -19.7392082 : f32
    %33 = vector.broadcast %cst_12 : f32 to vector<8x256xf32>
    %34 = arith.addf %32, %33 : vector<8x256xf32>
    %35 = arith.mulf %34, %12 : vector<8x256xf32>
    %cst_13 = arith.constant 1.000000e+00 : f32
    %36 = vector.broadcast %cst_13 : f32 to vector<8x256xf32>
    %37 = arith.addf %35, %36 : vector<8x256xf32>
    %c0_14 = arith.constant 0 : index
    %c0_15 = arith.constant 0 : index
    %38 = vector.load %arg5[%c0_14, %c0_15] : memref<8x256xf32, #tpu.memory_space<vmem>>, vector<8x256xf32>
    tpu.vector_store %arg5[%c0_14, %c0_15], %37 {strides = array<i32>} : memref<8x256xf32, #tpu.memory_space<vmem>>, vector<8x256xf32>,
    return
  }
  func.func @transform_0(%arg0: i32, %arg1: i32) -> (i32, i32) {
    %c0_i32 = arith.constant 0 : i32
    %c0_i32_0 = arith.constant 0 : i32
    return %arg0, %c0_i32 : i32, i32
  }
  func.func @transform_1(%arg0: i32, %arg1: i32) -> (i32, i32) {
    %c0_i32 = arith.constant 0 : i32
    %c0_i32_0 = arith.constant 0 : i32
    return %c0_i32, %arg1 : i32, i32
  }
  func.func @transform_2(%arg0: i32, %arg1: i32) -> (i32, i32) {
    %c0_i32 = arith.constant 0 : i32
    %c0_i32_0 = arith.constant 0 : i32
    return %c0_i32, %arg1 : i32, i32
  }
  func.func @transform_3(%arg0: i32, %arg1: i32) -> (i32, i32) {
    %c0_i32 = arith.constant 0 : i32
    return %arg0, %arg1 : i32, i32
  }
}

</mosaic_0001>

<bundles_post_ra>
// kernel: tpu_custom_call.1
= control target key start
LH: loop header
LB: loop body
LE: loop exit
PB: predicated region body
PF: predicated region fallthrough
CT: control target
= control target key end

     0   :  { %8 = vsyncpa [#allocation3], 0  ;;  %s672_s0 = inlined_call_operand.vmem [shape: f32[16,1], index: 0, kind: input, shape index: {}]   ;;  %s673_s1 = inlined_call_operand.vmem [shape: f32[1,256], index: 1, kind: input, shape index: {}]   ;;  %s674_s2 = inlined_call_operand.vmem [shape: f32[1,256], index: 2, kind: input, shape index: {}]   ;;  %s675_s3 = inlined_call_operand.hbm [shape: f32[16,256], index: 3, kind: output, shape index: {}]  }
   0x1   :  { %10 = vsyncpa [#allocation3 + $0x1], 0  ;;  %s569_s12 = smov 0   ;;  %s571_s13 = smov 0  }
   0x2   :  { %s573_s14 = smov 0   ;;  %s575_s15 = smov 0  }
   0x3   :  { %s577_s16 = smov 0   ;;  %s579_s17 = smov 0  }
   0x4 LB: > { %s396_s18 = sadd.s32 4294967295, %s546_s17   ;;  %s397_s19 = sadd.s32 4294967294, %s546_s17   ;;  %s546_s17 = sphi %s579_s17, %s16_s17   ;;  %s542_s16 = sphi %s577_s16, %s682_s16   ;;  %s538_s15 = sphi %s575_s15, %s681_s15   ;;  %s534_s14 = sphi %s573_s14, %s680_s14   ;;  %s530_s13 = sphi %s571_s13, %s679_s13   ;;  %s526_s12 = sphi %s569_s12, %s678_s12  }
   0x5   : > { %s28_s20 = sadd.s32 1, %s542_s16  ;;  %s115_s21 = sadd.s32 1, %s534_s14 }
   0x6   : > { %p30_p0 = scmp.ge.s32.totalorder %s28_s20, 2  ;;  %p125_p1 = scmp.ne.s32.totalorder %s534_s14, %s530_s13 }
   0x7   : > { %p126_p2 = scmp.eq.s32.totalorder %s396_s18, 1  ;;  %p131_p3 = scmp.ne.s32.totalorder %s530_s13, %s526_s12 }
   0x8   : > { %s684_s20 = smov (%p30_p0, %s28_s20), 0  ;;  %p132_p5 = scmp.eq.s32.totalorder %s397_s19, 1 }
   0x9   : > { %p609_p4 = por %p126_p2, %p125_p1  ;;  %s110_s23 = ssub.s32 %s542_s16, %s684_s20 }
   0xa   : > { %p402_p6 = scmp.ge.s32.totalorder %s546_s17, 1  ;;  %p113_p7 = scmp.eq.s32.totalorder %s110_s23, 0 }
   0xb   : > { %p616_p8 = por %p132_p5, %p131_p3  ;;  %p173_p9 = scmp.lt.s32.totalorder %s546_s17, 3 }
   0xc   : > { %s622_s25 = scalar_select %p113_p7, %s534_s14, %s115_s21  }
   0xd   : > { %p174_p10 = pnand %p402_p6, %p173_p9 }
   0xe   : > { %p204_p11 = scmp.lt.s32.totalorder (!%p174_p10), %s538_s15, 1  ;;  %s201_s8 = sand.u32 (!%p174_p10), 1, %s530_s13  }
   0xf   : > { %177 = sbr.rel (%p174_p10) target bundleno = 188 (0xbc), region = 32  ;;  %s403_s9 = sshll.u32 (!%p174_p10), %s201_s8, 4 }
  0x10   : > { %s410_s10 = sshll.u32 (!%p174_p10), %s538_s15, 4  ;;  %s203_s21 = scalar_lea.vmem (!%p174_p10), [#allocation2], %s403_s9 }
  0x11   : > { %s297_s19 = scalar_lea.hbm (!%p174_p10), %s675_s3, %s410_s10  ;;  %s299_s23 = sshll.u32 (!%p174_p10), %s203_s21, 4  ;;  %s300_s23 = int_to_ptr.vmem [resolvable:$true] %s299_s23 }
  0x12   : > { %s488_s4 = scalar_lea.hbm (!%p174_p10), %s675_s3, 32 }
  0x14   : > { %v548_v0 = vmov 0   ;;  %s205_s26 = scalar_select %p204_p11, %s538_s15, 1  ;;  %v220_v2 = vld [vmem:[%s673_s1] sm:$0x3] }
  0x15   : > { %467 = vset.pattern.permute.xlu0 %v548_v0  ;;  %v221_v3 = vld [vmem:[%s674_s2] sm:$0x3]  ;;  %v228_v4 = vperm.slane %v220_v2, 0  ;;  %v229_v5 = vperm.slane %v220_v2, 1  ;;  %s284_s15 = scalar_lea.sflag [#allocation3], %s201_s8 }
  0x16   : > { %s404_s27 = sshll.u32 %s205_s26, 3  ;;  %v235_v6 = vperm.slane %v221_v3, 0  ;;  %v236_v7 = vperm.slane %v221_v3, 1  ;;  %s301_s26 = sshll.u32 %s297_s19, 4  ;;  %s302_s26 = int_to_ptr.hbm [resolvable:$true] %s301_s26 }
  0x17   : > { %s207_s30 = scalar_lea.vmem %s672_s0, %s404_s27  ;;  %s482_s27 = sshra.s32 %s302_s26, 4  ;;  %s483_s27 = int_to_ptr.hbm [resolvable:$true] %s482_s27 }
  0x18   : > { %v219_v1 = vld [vmem:[%s207_s30] sm:$0xff]  ;;  %s484_s28 = scalar_lea.hbm %s483_s27, 16  ;;  %p489_p1 = scmp.lt.s32.totalorder %s483_s27, %s675_s3 }
  0x19   : > { %224 = vperm.xlu0 %467, %v219_v1   ;;  %p485_p12 = scmp.ne.s32.totalorder %s483_s27, %s484_s28  ;;  %p490_p2 = scmp.lt.s32.totalorder %s488_s4, %s484_s28 }
  0x1b   : > { %p486_p13 = pnand %p485_p12, %p609_p4  ;;  %p491_p3 = por %p490_p2, %p489_p1 }
  0x1d   : > { %p487_p0 = pneg %p486_p13 }
  0x1f   : > { %p492_p5 = pnand %p491_p3, %p487_p0 }
  0x8b   : > { %v225_v8 = vpop.permute.xlu0 %224 }
  0x8c   : > { %v232_v9 = vmul.f32 %v228_v4, %v225_v8  ;;  %v233_v10 = vmul.f32 %v229_v5, %v225_v8 }
  0x8e   : > { %v239_v11 = vadd.f32 %v235_v6, %v232_v9  ;;  %v240_v12 = vadd.f32 %v236_v7, %v233_v10 }
  0x90   : > { %v241_v13 = vadd.f32 0.5, %v239_v11  ;;  %v242_v14 = vadd.f32 0.5, %v240_v12 }
  0x92   : > { %v243_v15 = vfloor.f32 %v241_v13  ;;  %v244_v16 = vfloor.f32 %v242_v14 }
  0x94   : > { %v245_v17 = vsub.f32 %v239_v11, %v243_v15  ;;  %v246_v18 = vsub.f32 %v240_v12, %v244_v16 }
  0x96   : > { %v247_v19 = vmul.f32 %v245_v17, %v245_v17  ;;  %v248_v20 = vmul.f32 %v246_v18, %v246_v18 }
  0x98   : > { %v249_v21 = vmul.f32 0.28200597, %v247_v19  ;;  %v250_v22 = vmul.f32 0.28200597, %v248_v20 }
  0x9a   : > { %v251_v23 = vadd.f32 -1.7143908, %v249_v21  ;;  %v252_v24 = vadd.f32 -1.7143908, %v250_v22 }
  0x9c   : > { %v253_v25 = vmul.f32 %v251_v23, %v247_v19  ;;  %v254_v26 = vmul.f32 %v252_v24, %v248_v20 }
  0x9e   : > { %v255_v27 = vadd.f32 7.9035363, %v253_v25  ;;  %v256_v28 = vadd.f32 7.9035363, %v254_v26 }
  0xa0   : > { %v257_v29 = vmul.f32 %v255_v27, %v247_v19  ;;  %v258_v30 = vmul.f32 %v256_v28, %v248_v20 }
  0xa2   : > { %v259_v31 = vadd.f32 -26.426256, %v257_v29  ;;  %v260_v32 = vadd.f32 -26.426256, %v258_v30 }
  0xa4   : > { %v261_v33 = vmul.f32 %v259_v31, %v247_v19  ;;  %v262_v34 = vmul.f32 %v260_v32, %v248_v20 }
  0xa6   : > { %v263_v35 = vadd.f32 60.24464, %v261_v33  ;;  %v264_v36 = vadd.f32 60.24464, %v262_v34 }
  0xa8   : > { %v265_v37 = vmul.f32 %v263_v35, %v247_v19  ;;  %v266_v38 = vmul.f32 %v264_v36, %v248_v20 }
  0xaa   : > { %v267_v39 = vadd.f32 -85.45682, %v265_v37  ;;  %v268_v40 = vadd.f32 -85.45682, %v266_v38 }
  0xac   : > { %v269_v41 = vmul.f32 %v267_v39, %v247_v19  ;;  %v270_v42 = vmul.f32 %v268_v40, %v248_v20 }
  0xae   : > { %v271_v43 = vadd.f32 64.93939, %v269_v41  ;;  %v272_v44 = vadd.f32 64.93939, %v270_v42 }
  0xb0   : > { %v273_v45 = vmul.f32 %v271_v43, %v247_v19  ;;  %v274_v46 = vmul.f32 %v272_v44, %v248_v20 }
  0xb2   : > { %v275_v47 = vadd.f32 -19.739208, %v273_v45  ;;  %v276_v48 = vadd.f32 -19.739208, %v274_v46 }
  0xb4   : > { %v277_v49 = vmul.f32 %v275_v47, %v247_v19  ;;  %v278_v50 = vmul.f32 %v276_v48, %v248_v20 }
  0xb6   : > { %v279_v51 = vadd.f32 1.0, %v277_v49  ;;  %v280_v52 = vadd.f32 1.0, %v278_v50 }
  0xb8   : > { %281 = vst [vmem:[%s203_s21] sm:$0xff] %v279_v51 }
  0xb9   : > { %282 = vst [vmem:[%s203_s21 + $0x8] sm:$0xff] %v280_v52 }
  0xba   : > { %495 = shalt.err (!%p492_p5)
}
  0xbb   : > { %411 = dma.vmem_to_hbm [thread:$0]  (%p609_p4), %s300_s23, 256, %s302_s26, %s284_s15  }
  0xbc PF: > { %p417_p6 = scmp.ge.s32.totalorder %s546_s17, 2  ;;  %s313_s7 = sand.u32 1, %s526_s12  }
  0xbd   : > { %s314_s8 = scalar_lea.sflag [#allocation3], %s313_s7 }
  0xbe   : > { %p414_p7 = pnand %p417_p6, %p616_p8 }
  0xc0   : > { %p415_p9 = pneg %p414_p7 }
  0xc2   : > { %521 = dma.done.wait (%p415_p9), %s314_s8, 256  }
  0xc3   : > { %523 = vsyncadd (%p415_p9), %s314_s8, 4294967040  ;;  %s16_s17 = sadd.s32 1, %s546_s17   ;;  %s678_s12 = smov %s530_s13 }
  0xc4   : > { %p13_p10 = scmp.ge.s32.totalorder %s16_s17, 4   ;;  %s679_s13 = smov %s534_s14 }
  0xc5   : > { %s680_s14 = smov %s622_s25  ;;  %s681_s15 = smov %s542_s16 }
  0xc6   : > { %s682_s16 = smov %s684_s20  ;;  %15 = sbr.rel (!%p13_p10) target bundleno = 4 (0x4), region = 73 }
  0xcb   :  { %320 = vsyncpa [#allocation3], 1 }
  0xcc   :  { %322 = vsyncpa [#allocation3 + $0x1], 1 }

</bundles_post_ra>
